<compile_context>
chip_gen: v7x
topology: tpu7x:2x2x1
jax: 0.10.0
libtpu: 0.0.40
codegen_flags: <defaults>
</compile_context>

<pallas_src>
import functools
import math

import jax
import jax.numpy as jnp
from jax.experimental import pallas as pl
from jax.experimental.pallas import tpu as pltpu


# -----------------------------------------------------------------------------
# small helpers
# -----------------------------------------------------------------------------

def _round_up(x, m):
    return ((x + m - 1) // m) * m


def _pick_tiles(M, N, K):
    """MXU tile sizes.  256-wide M tiles feed the 2x256x256 MXU (v6e/v7x);
    N/K tiles grow so most convs need a single reduction step."""
    tm = min(256, _round_up(M, 128))
    nr = _round_up(N, 128)
    tn = nr if nr <= 640 else 256
    kr = _round_up(K, 128)
    tk = kr if kr <= 2048 else 512
    return tm, tn, tk


def _flat_shape(size):
    """Factor a flat element count into a lane-dense (rows, lanes) 2-D shape."""
    for lane in (4096, 2048, 1024, 512, 256, 128):
        if size % lane == 0:
            return size // lane, lane
    return 1, size


def _pick_row_block(rows, cols, itemsize, budget=2 * 1024 * 1024):
    """Largest row block (multiple of 8 dividing rows) under a VMEM budget."""
    cap = max(8, budget // max(1, cols * itemsize))
    for cand in (1024, 512, 256, 128, 64, 32, 16, 8):
        if cand <= cap and rows % cand == 0:
            return cand
    return rows  # full-extent block (always legal)


# -----------------------------------------------------------------------------
# Pallas matmul kernels: bf16 operands, f32 accumulator, fused epilogue
# -----------------------------------------------------------------------------

def _mm_kernel(a_ref, b_ref, bias_ref, o_ref, acc_ref, *, activation, scale):
    @pl.when(pl.program_id(2) == 0)
    def _():
        acc_ref[...] = jnp.zeros_like(acc_ref)

    acc_ref[...] += jnp.dot(a_ref[...], b_ref[...],
                            preferred_element_type=jnp.float32)

    @pl.when(pl.program_id(2) == pl.num_programs(2) - 1)
    def _():
        r = acc_ref[...] + bias_ref[...]
        if scale != 1.0:
            r = r * scale
        if activation == "relu":
            r = jnp.maximum(r, 0.0)
        elif activation == "tanh":
            r = jnp.tanh(r)
        elif activation == "sigmoid":
            r = jax.nn.sigmoid(r)
        o_ref[...] = r.astype(o_ref.dtype)


@functools.partial(jax.jit,
                   static_argnames=("activation", "scale", "out_dtype"))
def pallas_matmul(a, b, bias, activation=None, scale=1.0,
                  out_dtype=jnp.bfloat16):
    """(M,K) @ (K,N): bf16 MXU operands, f32 accumulate, fused
    bias + scale + activation epilogue, arbitrary output dtype."""
    M, K = a.shape
    K2, N = b.shape
    assert K == K2
    tm, tn, tk = _pick_tiles(M, N, K)
    Mp, Np, Kp = _round_up(M, tm), _round_up(N, tn), _round_up(K, tk)
    a_p = jnp.pad(a.astype(jnp.bfloat16), ((0, Mp - M), (0, Kp - K)))
    b_p = jnp.pad(b.astype(jnp.bfloat16), ((0, Kp - K), (0, Np - N)))
    bias_p = jnp.pad(bias.astype(jnp.float32), (0, Np - N)).reshape(1, Np)

    out = pl.pallas_call(
        functools.partial(_mm_kernel, activation=activation, scale=scale),
        out_shape=jax.ShapeDtypeStruct((Mp, Np), out_dtype),
        grid_spec=pltpu.PrefetchScalarGridSpec(
            num_scalar_prefetch=0,
            grid=(Mp // tm, Np // tn, Kp // tk),
            in_specs=[
                pl.BlockSpec((tm, tk), lambda i, j, k: (i, k)),
                pl.BlockSpec((tk, tn), lambda i, j, k: (k, j)),
                pl.BlockSpec((1, tn), lambda i, j, k: (0, j)),
            ],
            out_specs=pl.BlockSpec((tm, tn), lambda i, j, k: (i, j)),
            scratch_shapes=[pltpu.VMEM((tm, tn), jnp.float32)],
        ),
        compiler_params=pltpu.CompilerParams(
            dimension_semantics=("parallel", "parallel", "arbitrary")),
    )(a_p, b_p, bias_p)
    return out[:M, :N]


def _bmm_kernel(a_ref, b_ref, o_ref, acc_ref, *, scale):
    @pl.when(pl.program_id(3) == 0)
    def _():
        acc_ref[...] = jnp.zeros_like(acc_ref)

    acc_ref[...] += jnp.dot(a_ref[...], b_ref[...],
                            preferred_element_type=jnp.float32)

    @pl.when(pl.program_id(3) == pl.num_programs(3) - 1)
    def _():
        o_ref[...] = (acc_ref[...] * scale).astype(o_ref.dtype)


@functools.partial(jax.jit, static_argnames=("scale",))
def pallas_bmm(a, b, scale=1.0):
    """Batched (B,M,K) @ (B,K,N) with fused output scale; bf16 in/out."""
    B, M, K = a.shape
    _, K2, N = b.shape
    assert K == K2
    tm, tn, tk = _pick_tiles(M, N, K)
    Mp, Np, Kp = _round_up(M, tm), _round_up(N, tn), _round_up(K, tk)
    a_p = jnp.pad(a.astype(jnp.bfloat16), ((0, 0), (0, Mp - M), (0, Kp - K)))
    b_p = jnp.pad(b.astype(jnp.bfloat16), ((0, 0), (0, Kp - K), (0, Np - N)))

    out = pl.pallas_call(
        functools.partial(_bmm_kernel, scale=scale),
        out_shape=jax.ShapeDtypeStruct((B, Mp, Np), jnp.bfloat16),
        grid_spec=pltpu.PrefetchScalarGridSpec(
            num_scalar_prefetch=0,
            grid=(B, Mp // tm, Np // tn, Kp // tk),
            in_specs=[
                pl.BlockSpec((None, tm, tk), lambda b, i, j, k: (b, i, k)),
                pl.BlockSpec((None, tk, tn), lambda b, i, j, k: (b, k, j)),
            ],
            out_specs=pl.BlockSpec((None, tm, tn), lambda b, i, j, k: (b, i, j)),
            scratch_shapes=[pltpu.VMEM((tm, tn), jnp.float32)],
        ),
        compiler_params=pltpu.CompilerParams(
            dimension_semantics=("parallel", "parallel", "parallel",
                                 "arbitrary")),
    )(a_p, b_p)
    return out[:, :M, :N]


# -----------------------------------------------------------------------------
# Pallas elementwise / normalization kernels (gridded, lane-dense blocks)
# -----------------------------------------------------------------------------

def _inorm_kernel(x_ref, o_ref, *, relu):
    x = x_ref[...].astype(jnp.float32)
    mean = jnp.mean(x, axis=1, keepdims=True)
    var = jnp.mean(jnp.square(x - mean), axis=1, keepdims=True)
    y = (x - mean) * jax.lax.rsqrt(var + 1e-5)
    if relu:
        y = jnp.maximum(y, 0.0)
    o_ref[...] = y.astype(o_ref.dtype)


@functools.partial(jax.jit, static_argnames=("relu",))
def _instance_norm_2d(x2, relu):
    R, C = x2.shape
    rb = _pick_row_block(R, C, 4)
    spec = pl.BlockSpec((rb, C), lambda i: (i, 0))
    return pl.pallas_call(
        functools.partial(_inorm_kernel, relu=relu),
        out_shape=jax.ShapeDtypeStruct((R, C), x2.dtype),
        grid=(R // rb,), in_specs=[spec], out_specs=spec,
    )(x2)


def instance_norm(x, relu=False):
    n, c, h, w = x.shape
    return _instance_norm_2d(x.reshape(n * c, h * w),
                             relu=relu).reshape(x.shape)


def _eltwise_kernel(x_ref, o_ref, *, kind):
    x = x_ref[...].astype(jnp.float32)
    if kind == "relu":
        y = jnp.maximum(x, 0.0)
    elif kind == "tanh":
        y = jnp.tanh(x)
    elif kind == "sigmoid":
        y = jax.nn.sigmoid(x)
    else:
        y = x
    o_ref[...] = y.astype(o_ref.dtype)


@functools.partial(jax.jit, static_argnames=("kind",))
def _eltwise_flat(x2, kind):
    R, C = x2.shape
    rb = _pick_row_block(R, C, 4)
    spec = pl.BlockSpec((rb, C), lambda i: (i, 0))
    return pl.pallas_call(
        functools.partial(_eltwise_kernel, kind=kind),
        out_shape=jax.ShapeDtypeStruct((R, C), x2.dtype),
        grid=(R // rb,), in_specs=[spec], out_specs=spec,
    )(x2)


def eltwise(x, kind):
    r, c = _flat_shape(x.size)
    return _eltwise_flat(x.reshape(r, c), kind=kind).reshape(x.shape)


def _add_relu_kernel(x_ref, y_ref, o_ref):
    s = x_ref[...].astype(jnp.float32) + y_ref[...].astype(jnp.float32)
    o_ref[...] = jnp.maximum(s, 0.0).astype(o_ref.dtype)


@jax.jit
def _add_relu_flat(x2, y2):
    R, C = x2.shape
    rb = _pick_row_block(R, C, 4)
    spec = pl.BlockSpec((rb, C), lambda i: (i, 0))
    return pl.pallas_call(
        _add_relu_kernel,
        out_shape=jax.ShapeDtypeStruct((R, C), x2.dtype),
        grid=(R // rb,), in_specs=[spec, spec], out_specs=spec,
    )(x2, y2)


def add_relu(x, y):
    r, c = _flat_shape(x.size)
    return _add_relu_flat(x.reshape(r, c), y.reshape(r, c)).reshape(x.shape)


def _gru_kernel(h_ref, z_ref, q_ref, o_ref):
    h = h_ref[...].astype(jnp.float32)
    z = z_ref[...].astype(jnp.float32)
    q = q_ref[...].astype(jnp.float32)
    o_ref[...] = ((1.0 - z) * h + z * q).astype(o_ref.dtype)


@jax.jit
def _gru_combine_flat(h2, z2, q2):
    R, C = h2.shape
    rb = _pick_row_block(R, C, 4)
    spec = pl.BlockSpec((rb, C), lambda i: (i, 0))
    return pl.pallas_call(
        _gru_kernel,
        out_shape=jax.ShapeDtypeStruct((R, C), h2.dtype),
        grid=(R // rb,), in_specs=[spec, spec, spec], out_specs=spec,
    )(h2, z2, q2)


def gru_combine(h, z, q):
    r, c = _flat_shape(h.size)
    return _gru_combine_flat(h.reshape(r, c), z.reshape(r, c),
                             q.reshape(r, c)).reshape(h.shape)


# -----------------------------------------------------------------------------
# Conv2d = im2col (JAX glue) + Pallas matmul with fused epilogue
# -----------------------------------------------------------------------------

def im2col(x, kh, kw, stride, padding):
    """x NCHW -> (N, C*kh*kw, Ho, Wo), channel order (C, kh, kw) like F.unfold."""
    sh, sw = stride
    ph, pw = padding
    n, c, h, w = x.shape
    xp = jnp.pad(x, ((0, 0), (0, 0), (ph, ph), (pw, pw)))
    ho = (h + 2 * ph - kh) // sh + 1
    wo = (w + 2 * pw - kw) // sw + 1
    cols = []
    for i in range(kh):
        for j in range(kw):
            cols.append(xp[:, :, i:i + sh * (ho - 1) + 1:sh,
                           j:j + sw * (wo - 1) + 1:sw])
    col = jnp.stack(cols, axis=2)            # (N, C, kh*kw, Ho, Wo)
    return col.reshape(n, c * kh * kw, ho, wo)


# TODO(synk): im2col is still materialized in HBM (kh*kw read amplification);
# an in-kernel halo-DMA im2col would remove that traffic entirely.
def conv2d(x, p, stride=(1, 1), padding=(0, 0), activation=None, scale=1.0,
           out_dtype=jnp.bfloat16):
    w, b = p["w"], p["b"]
    cout, cin, kh, kw = w.shape
    n = x.shape[0]
    if kh == 1 and kw == 1 and padding == (0, 0):
        xs = x if stride == (1, 1) else x[:, :, ::stride[0], ::stride[1]]
        _, _, ho, wo = xs.shape
        a = xs.transpose(0, 2, 3, 1).reshape(n * ho * wo, cin)
        K = cin
    else:
        col = im2col(x, kh, kw, stride, padding)      # (N, K, Ho, Wo)
        _, K, ho, wo = col.shape
        a = col.transpose(0, 2, 3, 1).reshape(n * ho * wo, K)
    bmat = w.reshape(cout, K).T
    out = pallas_matmul(a, bmat, b, activation=activation, scale=scale,
                        out_dtype=out_dtype)          # (M, Cout)
    return out.reshape(n, ho, wo, cout).transpose(0, 3, 1, 2)


# -----------------------------------------------------------------------------
# BasicEncoder (fnet: instance norm, cnet: frozen batch norm fused as scale)
# -----------------------------------------------------------------------------

_BN_SCALE = 1.0 / math.sqrt(1.0 + 1e-5)
# TODO(synk): frozen BatchNorm uses default running stats (mean=0, var=1,
# identity affine); real checkpoints need their stats folded into the epilogue.


def residual_block(x, p, norm, stride):
    if norm == "instance":
        y = conv2d(x, p["conv1"], stride=(stride, stride), padding=(1, 1))
        y = instance_norm(y, relu=True)
        y = conv2d(y, p["conv2"], padding=(1, 1))
        y = instance_norm(y, relu=True)
        if stride != 1:
            x = conv2d(x, p["down"], stride=(stride, stride))
            x = instance_norm(x, relu=False)
    else:  # frozen batch norm -> fused scale + relu in the conv epilogue
        y = conv2d(x, p["conv1"], stride=(stride, stride), padding=(1, 1),
                   activation="relu", scale=_BN_SCALE)
        y = conv2d(y, p["conv2"], padding=(1, 1),
                   activation="relu", scale=_BN_SCALE)
        if stride != 1:
            x = conv2d(x, p["down"], stride=(stride, stride), scale=_BN_SCALE)
    return add_relu(x, y)


def basic_encoder(x, params, norm):
    if norm == "instance":
        x = conv2d(x, params["conv1"], stride=(2, 2), padding=(3, 3))
        x = instance_norm(x, relu=True)
    else:
        x = conv2d(x, params["conv1"], stride=(2, 2), padding=(3, 3),
                   activation="relu", scale=_BN_SCALE)
    for name, stride in (("l1a", 1), ("l1b", 1), ("l2a", 2),
                         ("l2b", 1), ("l3a", 2), ("l3b", 1)):
        x = residual_block(x, params[name], norm, stride)
    x = conv2d(x, params["conv2"])
    return x


# -----------------------------------------------------------------------------
# Correlation pyramid + lookup (CorrBlock)
# -----------------------------------------------------------------------------

def bilinear_sampler(img, coords):
    """grid_sample(bilinear, zeros padding, align_corners=True) on pixel coords.
    img: (B, C, H, W); coords: (B, h, w, 2) with (x, y)."""
    B, C, H, W = img.shape
    x = coords[..., 0]
    y = coords[..., 1]
    x0 = jnp.floor(x)
    y0 = jnp.floor(y)
    x1 = x0 + 1.0
    y1 = y0 + 1.0
    wa = (x1 - x) * (y1 - y)
    wb = (x1 - x) * (y - y0)
    wc = (x - x0) * (y1 - y)
    wd = (x - x0) * (y - y0)
    flat = img.reshape(B, C, H * W)

    def gather(ix, iy):
        valid = ((ix >= 0) & (ix <= W - 1) & (iy >= 0) & (iy <= H - 1))
        ixc = jnp.clip(ix, 0, W - 1).astype(jnp.int32)
        iyc = jnp.clip(iy, 0, H - 1).astype(jnp.int32)
        idx = (iyc * W + ixc).reshape(B, 1, -1)
        vals = jnp.take_along_axis(
            flat, jnp.broadcast_to(idx, (B, C, idx.shape[-1])), axis=2)
        vals = vals.reshape(B, C, coords.shape[1], coords.shape[2])
        return vals * valid.astype(img.dtype)[:, None]

    out = (gather(x0, y0) * wa[:, None] + gather(x0, y1) * wb[:, None] +
           gather(x1, y0) * wc[:, None] + gather(x1, y1) * wd[:, None])
    return out


def avg_pool2(x):
    b, c, h, w = x.shape
    return x.reshape(b, c, h // 2, 2, w // 2, 2).mean(axis=(3, 5))


class CorrBlockJ:
    def __init__(self, fmap1, fmap2, num_levels=4, radius=4):
        B, D, H, W = fmap1.shape
        f1 = fmap1.reshape(B, D, H * W).transpose(0, 2, 1)   # (B, HW, D)
        f2 = fmap2.reshape(B, D, H * W)                      # (B, D, HW)
        # one batched Pallas matmul with the 1/sqrt(D) scale fused; bf16 corr
        corr = pallas_bmm(f1, f2, scale=1.0 / math.sqrt(D))
        corr = corr.reshape(B * H * W, 1, H, W)
        self.pyramid = [corr]
        for _ in range(num_levels - 1):
            corr = avg_pool2(corr)
            self.pyramid.append(corr)
        self.num_levels = num_levels
        self.radius = radius

    # TODO(synk): data-dependent bilinear lookup kept in plain JAX (gather);
    # a windowed-DMA Pallas kernel would cut its per-iteration HBM traffic.
    def __call__(self, coords):
        r = self.radius
        coords = coords.transpose(0, 2, 3, 1)       # (B, H, W, 2) -> (x, y)
        B, H, W, _ = coords.shape
        d = jnp.linspace(-r, r, 2 * r + 1, dtype=jnp.float32)
        delta = jnp.stack(jnp.meshgrid(d, d, indexing="ij"), axis=-1)
        out = []
        for i in range(self.num_levels):
            corr = self.pyramid[i]
            centroid = coords.reshape(B * H * W, 1, 1, 2) / (2 ** i)
            coords_lvl = centroid + delta.reshape(1, 2 * r + 1, 2 * r + 1, 2)
            sampled = bilinear_sampler(corr, coords_lvl)
            out.append(sampled.reshape(B, H, W, -1))
        o = jnp.concatenate(out, axis=-1)
        return o.transpose(0, 3, 1, 2).astype(jnp.bfloat16)


# -----------------------------------------------------------------------------
# BasicUpdateBlock (motion encoder + SepConvGRU + flow head + mask head)
# -----------------------------------------------------------------------------

def motion_encoder(flow, corr, p):
    cor = conv2d(corr, p["convc1"], activation="relu")
    cor = conv2d(cor, p["convc2"], padding=(1, 1), activation="relu")
    flo = conv2d(flow, p["convf1"], padding=(3, 3), activation="relu")
    flo = conv2d(flo, p["convf2"], padding=(1, 1), activation="relu")
    out = conv2d(jnp.concatenate([cor, flo], axis=1), p["conv"],
                 padding=(1, 1), activation="relu")
    return jnp.concatenate([out, flow.astype(jnp.bfloat16)], axis=1)


def conv_gru_step(h, x, pzr, pq, padding):
    hdim = h.shape[1]
    hx = jnp.concatenate([h, x], axis=1)
    zr = conv2d(hx, pzr, padding=padding, activation="sigmoid")  # fused z | r
    z, r = zr[:, :hdim], zr[:, hdim:]
    q = conv2d(jnp.concatenate([r * h, x], axis=1), pq,
               padding=padding, activation="tanh")
    return gru_combine(h, z, q)


def basic_update_block(net, inp, corr, flow, p):
    mf = motion_encoder(flow, corr, p["enc"])
    x = jnp.concatenate([inp, mf], axis=1)
    net = conv_gru_step(net, x, p["convzr1"], p["convq1"], (0, 2))
    net = conv_gru_step(net, x, p["convzr2"], p["convq2"], (2, 0))
    fm = conv2d(net, p["fh1m1"], padding=(1, 1), activation="relu")  # fused
    delta_flow = conv2d(fm[:, :256], p["fh2"], padding=(1, 1),
                        out_dtype=jnp.float32)
    mask = conv2d(fm[:, 256:], p["m2"], scale=0.25)     # fused 0.25 * mask
    return net, mask, delta_flow


def fuse_update_params(u):
    """Concatenate same-input convs along Cout (done once per forward)."""
    def cat(p1, p2):
        return {"w": jnp.concatenate([p1["w"], p2["w"]], axis=0),
                "b": jnp.concatenate([p1["b"], p2["b"]], axis=0)}
    return {"enc": u["enc"],
            "convzr1": cat(u["convz1"], u["convr1"]), "convq1": u["convq1"],
            "convzr2": cat(u["convz2"], u["convr2"]), "convq2": u["convq2"],
            "fh1m1": cat(u["fh1"], u["m1"]),
            "fh2": u["fh2"], "m2": u["m2"]}


# -----------------------------------------------------------------------------
# RAFT forward helpers
# -----------------------------------------------------------------------------

def coords_grid(n, h, w):
    ys, xs = jnp.meshgrid(jnp.arange(h), jnp.arange(w), indexing="ij")
    coords = jnp.stack([xs, ys], axis=0).astype(jnp.float32)   # [0]=x, [1]=y
    return jnp.broadcast_to(coords[None], (n, 2, h, w))


def upsample_flow(flow, mask):
    n, _, h, w = flow.shape
    mask = mask.astype(jnp.float32).reshape(n, 1, 9, 8, 8, h, w)
    mask = jax.nn.softmax(mask, axis=2)
    up_flow = im2col(8.0 * flow, 3, 3, (1, 1), (1, 1))      # (N, 18, H, W)
    up_flow = up_flow.reshape(n, 2, 9, 1, 1, h, w)
    up = jnp.sum(mask * up_flow, axis=2)                     # (N, 2, 8, 8, H, W)
    up = up.transpose(0, 1, 4, 2, 5, 3)
    return up.reshape(n, 2, 8 * h, 8 * w)


def raft_forward(params, image1, image2, iters=20, flow_init=None):
    """RAFT.forward with extract_mode=True: returns the last upsampled flow."""
    hdim = cdim = 128
    n = image1.shape[0]

    # fnet([image1, image2]): concat along batch, encode, split
    fmaps = basic_encoder(jnp.concatenate([image1, image2], axis=0),
                          params["fnet"], "instance")
    fmap1, fmap2 = fmaps[:n], fmaps[n:]
    corr_fn = CorrBlockJ(fmap1, fmap2, num_levels=4, radius=4)

    cnet = basic_encoder(image1, params["cnet"], "batch")
    net = eltwise(cnet[:, :hdim], "tanh")
    inp = eltwise(cnet[:, hdim:hdim + cdim], "relu")

    upd = fuse_update_params(params["update"])

    _, _, H, W = image1.shape
    coords0 = coords_grid(n, H // 8, W // 8)
    coords1 = coords_grid(n, H // 8, W // 8)
    if flow_init is not None:
        coords1 = coords1 + flow_init

    flow_up = None
    for _ in range(iters):
        corr = corr_fn(coords1)
        flow = coords1 - coords0
        net, up_mask, delta_flow = basic_update_block(net, inp, corr, flow, upd)
        coords1 = coords1 + delta_flow
        flow_up = upsample_flow(coords1 - coords0, up_mask)
    return flow_up


# -----------------------------------------------------------------------------
# Deterministic parameter init (kaiming_normal fan_in, zero bias)
# -----------------------------------------------------------------------------

def init_raft_params(key):
    counter = [0]

    def nk():
        counter[0] += 1
        return jax.random.fold_in(key, counter[0])

    def conv_param(cout, cin, kh, kw):
        std = math.sqrt(2.0 / (cin * kh * kw))
        w = jax.random.normal(nk(), (cout, cin, kh, kw), jnp.float32) * std
        return {"w": w, "b": jnp.zeros((cout,), jnp.float32)}

    def encoder(output_dim):
        def block(cin, cout, stride):
            d = {"conv1": conv_param(cout, cin, 3, 3),
                 "conv2": conv_param(cout, cout, 3, 3)}
            if stride != 1:
                d["down"] = conv_param(cout, cin, 1, 1)
            return d
        return {"conv1": conv_param(64, 3, 7, 7),
                "l1a": block(64, 64, 1), "l1b": block(64, 64, 1),
                "l2a": block(64, 96, 2), "l2b": block(96, 96, 1),
                "l3a": block(96, 128, 2), "l3b": block(128, 128, 1),
                "conv2": conv_param(output_dim, 128, 1, 1)}

    params = {"fnet": encoder(256), "cnet": encoder(256)}
    params["update"] = {
        "enc": {"convc1": conv_param(256, 324, 1, 1),
                "convc2": conv_param(192, 256, 3, 3),
                "convf1": conv_param(128, 2, 7, 7),
                "convf2": conv_param(64, 128, 3, 3),
                "conv": conv_param(126, 256, 3, 3)},
        "convz1": conv_param(128, 384, 1, 5),
        "convr1": conv_param(128, 384, 1, 5),
        "convq1": conv_param(128, 384, 1, 5),
        "convz2": conv_param(128, 384, 5, 1),
        "convr2": conv_param(128, 384, 5, 1),
        "convq2": conv_param(128, 384, 5, 1),
        "fh1": conv_param(256, 128, 3, 3),
        "fh2": conv_param(2, 256, 3, 3),
        "m1": conv_param(256, 128, 3, 3),
        "m2": conv_param(576, 256, 1, 1),
    }
    return params


# -----------------------------------------------------------------------------
if __name__ == "__main__":
    key = jax.random.PRNGKey(0)
    params = init_raft_params(key)

    k1, k2 = jax.random.split(jax.random.fold_in(key, 999))
    # Small shapes: 1 frame pair, 3x64x64 (divisible by 8, so H/8 = W/8 = 8).
    image1 = jax.random.normal(k1, (1, 3, 64, 64), jnp.float32)
    image2 = jax.random.normal(k2, (1, 3, 64, 64), jnp.float32)

    # iters kept small for the smoke test (forward default is 20).
    flow_up = raft_forward(params, image1, image2, iters=2)
    flow_up = jax.block_until_ready(flow_up)
    assert flow_up.shape == (1, 2, 64, 64)
    assert flow_up.dtype == jnp.float32
    print("KERNEL_OK")
</pallas_src>

<mosaic_0001>
module attributes {stable_mosaic.version = 11 : i64} {
  func.func @_mm_kernel(%arg0: i32, %arg1: i32, %arg2: i32, %arg3: memref<256x256xbf16, #tpu.memory_space<vmem>>, %arg4: memref<256x128xbf16, #tpu.memory_space<vmem>>, %arg5: memref<1x128xf32, #tpu.memory_space<vmem>>, %arg6: memref<256x128xbf16, #tpu.memory_space<vmem>>, %arg7: memref<256x128xf32, #tpu.memory_space<vmem>>) attributes {dimension_semantics = [#tpu.dimension_semantics<parallel>, #tpu.dimension_semantics<parallel>, #tpu.dimension_semantics<arbitrary>], iteration_bounds = array<i64: 8, 1, 1>, scalar_prefetch = 0 : i64, scratch_operands = 1 : i64, tpu.core_type = #tpu.core_type<tc>, window_params = [{transform_indices = @transform_0, window_bounds = array<i64: 256, 256>}, {transform_indices = @transform_1, window_bounds = array<i64: 256, 128>}, {transform_indices = @transform_2, window_bounds = array<i64: 1, 128>}, {transform_indices = @transform_3, window_bounds = array<i64: 256, 128>}]} {
    %c0_i32 = arith.constant 0 : i32
    %0 = arith.cmpi eq, %arg2, %c0_i32 : i32
    %1 = arith.extui %0 : i1 to i32
    %c0_i32_0 = arith.constant 0 : i32
    %2 = arith.cmpi ne, %1, %c0_i32_0 : i32
    scf.if %2 {
      %cst_10 = arith.constant 0.000000e+00 : f32
      %12 = vector.broadcast %cst_10 : f32 to vector<256x128xf32>
      %c0_11 = arith.constant 0 : index
      %c0_12 = arith.constant 0 : index
      %13 = vector.load %arg7[%c0_11, %c0_12] : memref<256x128xf32, #tpu.memory_space<vmem>>, vector<256x128xf32>
      tpu.vector_store %arg7[%c0_11, %c0_12], %12 {strides = array<i32>} : memref<256x128xf32, #tpu.memory_space<vmem>>, vector<256x128xf32>,
    } else {
    }
    %c0 = arith.constant 0 : index
    %c0_1 = arith.constant 0 : index
    %3 = vector.load %arg7[%c0, %c0_1] : memref<256x128xf32, #tpu.memory_space<vmem>>, vector<256x128xf32>
    %c0_2 = arith.constant 0 : index
    %c0_3 = arith.constant 0 : index
    %4 = vector.load %arg3[%c0_2, %c0_3] : memref<256x256xbf16, #tpu.memory_space<vmem>>, vector<256x256xbf16>
    %c0_4 = arith.constant 0 : index
    %c0_5 = arith.constant 0 : index
    %5 = vector.load %arg4[%c0_4, %c0_5] : memref<256x128xbf16, #tpu.memory_space<vmem>>, vector<256x128xbf16>
    %cst = arith.constant dense<0.000000e+00> : vector<256x128xf32>
    %6 = tpu.matmul %4, %5, %cst {dimension_numbers = #tpu.dot_dimension_numbers<[1], [0], [0], [1], [0, 0, 1, 1], [], []>} : vector<256x256xbf16>, vector<256x128xbf16>, vector<256x128xf32> -> vector<256x128xf32>
    %7 = arith.addf %3, %6 : vector<256x128xf32>
    %c0_6 = arith.constant 0 : index
    %c0_7 = arith.constant 0 : index
    %8 = vector.load %arg7[%c0_6, %c0_7] : memref<256x128xf32, #tpu.memory_space<vmem>>, vector<256x128xf32>
    tpu.vector_store %arg7[%c0_6, %c0_7], %7 {strides = array<i32>} : memref<256x128xf32, #tpu.memory_space<vmem>>, vector<256x128xf32>,
    %c0_i32_8 = arith.constant 0 : i32
    %9 = arith.cmpi eq, %arg2, %c0_i32_8 : i32
    %10 = arith.extui %9 : i1 to i32
    %c0_i32_9 = arith.constant 0 : i32
    %11 = arith.cmpi ne, %10, %c0_i32_9 : i32
    scf.if %11 {
      %c0_10 = arith.constant 0 : index
      %c0_11 = arith.constant 0 : index
      %12 = vector.load %arg7[%c0_10, %c0_11] : memref<256x128xf32, #tpu.memory_space<vmem>>, vector<256x128xf32>
      %c0_12 = arith.constant 0 : index
      %c0_13 = arith.constant 0 : index
      %13 = vector.load %arg5[%c0_12, %c0_13] : memref<1x128xf32, #tpu.memory_space<vmem>>, vector<1x128xf32>
      %14 = vector.broadcast %13 : vector<1x128xf32> to vector<256x128xf32>
      %15 = arith.addf %12, %14 : vector<256x128xf32>
      %16 = arith.truncf %15 : vector<256x128xf32> to vector<256x128xbf16>
      %c0_14 = arith.constant 0 : index
      %c0_15 = arith.constant 0 : index
      %17 = vector.load %arg6[%c0_14, %c0_15] : memref<256x128xbf16, #tpu.memory_space<vmem>>, vector<256x128xbf16>
      tpu.vector_store %arg6[%c0_14, %c0_15], %16 {strides = array<i32>} : memref<256x128xbf16, #tpu.memory_space<vmem>>, vector<256x128xbf16>,
    } else {
    }
    return
  }
  func.func @transform_0(%arg0: i32, %arg1: i32, %arg2: i32) -> (i32, i32) {
    %c0_i32 = arith.constant 0 : i32
    return %arg0, %arg2 : i32, i32
  }
  func.func @transform_1(%arg0: i32, %arg1: i32, %arg2: i32) -> (i32, i32) {
    %c0_i32 = arith.constant 0 : i32
    return %arg2, %arg1 : i32, i32
  }
  func.func @transform_2(%arg0: i32, %arg1: i32, %arg2: i32) -> (i32, i32) {
    %c0_i32 = arith.constant 0 : i32
    %c0_i32_0 = arith.constant 0 : i32
    return %c0_i32, %arg1 : i32, i32
  }
  func.func @transform_3(%arg0: i32, %arg1: i32, %arg2: i32) -> (i32, i32) {
    %c0_i32 = arith.constant 0 : i32
    return %arg0, %arg1 : i32, i32
  }
}

</mosaic_0001>

<bundles_post_ra>
// kernel: pallas_matmul.1
= control target key start
LH: loop header
LB: loop body
LE: loop exit
PB: predicated region body
PF: predicated region fallthrough
CT: control target
= control target key end

     0   :  { %s1712_s12 = smov 0   ;;  %s1714_s13 = smov 0   ;;  %s1886_s0 = inlined_call_operand.vmem [shape: bf16[2048,256], index: 0, kind: input, shape index: {}]   ;;  %s1887_s1 = inlined_call_operand.vmem [shape: bf16[256,128], index: 1, kind: input, shape index: {}]   ;;  %s1888_s2 = inlined_call_operand.vmem [shape: f32[1,128], index: 2, kind: input, shape index: {}]   ;;  %s1889_s3 = inlined_call_operand.vmem [shape: bf16[2048,128], index: 3, kind: output, shape index: {}]  }
   0x1   :  { %s1716_s14 = smov 0  }
   0x2 LB: > { %s32_s15 = sadd.s32 1, %s1686_s13  ;;  %p1235_p0 = scmp.ge.s32.totalorder %s1690_s14, 1  ;;  %s1690_s14 = sphi %s1716_s14, %s13_s14   ;;  %s1686_s13 = sphi %s1714_s13, %s1891_s13   ;;  %s1682_s12 = sphi %s1712_s12, %s1890_s12  }
   0x3   : > { %p34_p1 = scmp.ge.s32.totalorder %s32_s15, 8  ;;  %p191_p2 = scmp.lt.s32.totalorder %s1690_s14, 9 }
   0x5   : > { %s1893_s15 = smov (%p34_p1, %s32_s15), 0  ;;  %p192_p3 = pnand %p1235_p0, %p191_p2 }
   0x6   : > { %v1604_v0 = vld [vmem:[%s1887_s1 + $0x40] sm:$0xff] (!%p192_p3)   ;;  %s1236_s18 = sshll.u32 (!%p192_p3), %s1682_s12, 5  ;;  %v1606_v2 = vld [vmem:[%s1887_s1 + $0x48] sm:$0xff] (!%p192_p3)   ;;  %v1608_v4 = vld [vmem:[%s1887_s1 + $0x50] sm:$0xff] (!%p192_p3)  }
   0x7   : > { %195 = sbr.rel (%p192_p3) target bundleno = 317 (0x13d), region = 32  ;;  %v1605_v1 = vld [vmem:[%s1887_s1] sm:$0xff] (!%p192_p3)   ;;  %1452 = vmatprep.subr.bf16.mxu0 (!%p192_p3), %v1604_v0  ;;  %1564 = vmatprep.subr.bf16.mxu1 (!%p192_p3), %v1604_v0  ;;  %v1607_v3 = vld [vmem:[%s1887_s1 + $0x8] sm:$0xff] (!%p192_p3)   ;;  %p236_p4 = scmp.lt.s32.totalorder (!%p192_p3), %s1236_s18, 255  ;;  %v1609_v5 = vld [vmem:[%s1887_s1 + $0x10] sm:$0xff] (!%p192_p3)  }
   0x8   : > { %1453 = vmatpush3.bf16.msra.mxu0 (!%p192_p3), %v1605_v1  ;;  %1572 = vmatpush3.bf16.msra.mxu1 (!%p192_p3), %v1605_v1  ;;  %v1610_v6 = vld [vmem:[%s1887_s1 + $0x58] sm:$0xff] (!%p192_p3)   ;;  %v1612_v8 = vld [vmem:[%s1887_s1 + $0x60] sm:$0xff] (!%p192_p3)   ;;  %v1614_v10 = vld [vmem:[%s1887_s1 + $0x68] sm:$0xff] (!%p192_p3)  }
   0x9   : > { %1454 = vmatprep.subr.bf16.mxu0 (!%p192_p3), %v1606_v2  ;;  %1565 = vmatprep.subr.bf16.mxu1 (!%p192_p3), %v1606_v2  ;;  %v1611_v7 = vld [vmem:[%s1887_s1 + $0x18] sm:$0xff] (!%p192_p3)   ;;  %v1613_v9 = vld [vmem:[%s1887_s1 + $0x20] sm:$0xff] (!%p192_p3)   ;;  %v1615_v13 = vld [vmem:[%s1887_s1 + $0x28] sm:$0xff] (!%p192_p3)  }
   0xa   : > { %v1616_v14 = vld [vmem:[%s1887_s1 + $0x70] sm:$0xff] (!%p192_p3)   ;;  %v1618_v16 = vld [vmem:[%s1887_s1 + $0x78] sm:$0xff] (!%p192_p3)   ;;  %v1821_v56 = vld [vmem:[%s1888_s2] ss:$0 sm:$0xff] (!%p192_p3) }
   0xb   : > { %v1617_v15 = vld [vmem:[%s1887_s1 + $0x30] sm:$0xff] (!%p192_p3)   ;;  %v1619_v17 = vld [vmem:[%s1887_s1 + $0x38] sm:$0xff] (!%p192_p3)  }
   0xc   : > { %1455 = vmatpush3.bf16.msra.mxu0 (!%p192_p3), %v1607_v3  ;;  %1573 = vmatpush3.bf16.msra.mxu1 (!%p192_p3), %v1607_v3 }
   0xd   : > { %1456 = vmatprep.subr.bf16.mxu0 (!%p192_p3), %v1608_v4  ;;  %1566 = vmatprep.subr.bf16.mxu1 (!%p192_p3), %v1608_v4 }
   0xe   : > { %s1895_s18 = smov (!%p236_p4, %s1236_s18), 255 }
   0xf   : > { %s1324_s6 = sshll.u32 %s1895_s18, 3  ;;  %s1240_s5 = sshll.u32 %s1895_s18, 2 }
  0x10   : > { %1457 = vmatpush3.bf16.msra.mxu0 %v1609_v5  ;;  %1574 = vmatpush3.bf16.msra.mxu1 %v1609_v5  ;;  %s1763_s11 = scalar_lea.vmem %s1886_s0, %s1324_s6  ;;  %s1831_s8 = scalar_lea.vmem %s1889_s3, %s1240_s5 }
  0x11   : > { %1458 = vmatprep.subr.bf16.mxu0 %v1610_v6  ;;  %1567 = vmatprep.subr.bf16.mxu1 %v1610_v6  ;;  %v1622_v11 = vld [vmem:[%s1763_s11 + $0x4] ss:$8 sps:$4 sm:$0xff]   ;;  %v1620_v18 = vld [vmem:[%s1763_s11] ss:$8 sps:$4 sm:$0xff]   ;;  %v1626_v20 = vld [vmem:[%s1763_s11 + $0x14] ss:$8 sps:$4 sm:$0xff]  }
  0x12   : > { %v1625_v12 = vld [vmem:[%s1763_s11 + $0x84] ss:$8 sps:$4 sm:$0xff]   ;;  %688 = vmatprep.mubr.bf16.mxu0 %v1622_v11  ;;  %v1623_v19 = vld [vmem:[%s1763_s11 + $0x80] ss:$8 sps:$4 sm:$0xff]   ;;  %v1628_v21 = vld [vmem:[%s1763_s11 + $0x94] ss:$8 sps:$4 sm:$0xff]  }
  0x13   : > { %752 = vmatprep.mubr.bf16.mxu1 %v1625_v12  ;;  %v1630_v22 = vld [vmem:[%s1763_s11 + $0x10] ss:$8 sps:$4 sm:$0xff]   ;;  %v1632_v24 = vld [vmem:[%s1763_s11 + $0x24] ss:$8 sps:$4 sm:$0xff]   ;;  %v1636_v26 = vld [vmem:[%s1763_s11 + $0x20] ss:$8 sps:$4 sm:$0xff]  }
  0x14   : > { %1459 = vmatpush3.bf16.msra.mxu0 %v1611_v7  ;;  %1575 = vmatpush3.bf16.msra.mxu1 %v1611_v7  ;;  %v1631_v23 = vld [vmem:[%s1763_s11 + $0x90] ss:$8 sps:$4 sm:$0xff]   ;;  %v1634_v25 = vld [vmem:[%s1763_s11 + $0xa4] ss:$8 sps:$4 sm:$0xff]   ;;  %v1637_v27 = vld [vmem:[%s1763_s11 + $0xa0] ss:$8 sps:$4 sm:$0xff]  }
  0x15   : > { %1460 = vmatprep.subr.bf16.mxu0 %v1612_v8  ;;  %1568 = vmatprep.subr.bf16.mxu1 %v1612_v8  ;;  %v1638_v28 = vld [vmem:[%s1763_s11 + $0x34] ss:$8 sps:$4 sm:$0xff]   ;;  %v1642_v30 = vld [vmem:[%s1763_s11 + $0x30] ss:$8 sps:$4 sm:$0xff]   ;;  %v1644_v32 = vld [vmem:[%s1763_s11 + $0x44] ss:$8 sps:$4 sm:$0xff]  }
  0x16   : > { %v1640_v29 = vld [vmem:[%s1763_s11 + $0xb4] ss:$8 sps:$4 sm:$0xff]   ;;  %v1643_v31 = vld [vmem:[%s1763_s11 + $0xb0] ss:$8 sps:$4 sm:$0xff]   ;;  %v1646_v33 = vld [vmem:[%s1763_s11 + $0xc4] ss:$8 sps:$4 sm:$0xff]  }
  0x17   : > { %v1648_v34 = vld [vmem:[%s1763_s11 + $0x40] ss:$8 sps:$4 sm:$0xff]   ;;  %v1650_v36 = vld [vmem:[%s1763_s11 + $0x54] ss:$8 sps:$4 sm:$0xff]   ;;  %v1654_v38 = vld [vmem:[%s1763_s11 + $0x50] ss:$8 sps:$4 sm:$0xff]  }
  0x18   : > { %1461 = vmatpush3.bf16.msra.mxu0 %v1613_v9  ;;  %1576 = vmatpush3.bf16.msra.mxu1 %v1613_v9  ;;  %v1649_v35 = vld [vmem:[%s1763_s11 + $0xc0] ss:$8 sps:$4 sm:$0xff]   ;;  %v1652_v37 = vld [vmem:[%s1763_s11 + $0xd4] ss:$8 sps:$4 sm:$0xff]   ;;  %v1655_v39 = vld [vmem:[%s1763_s11 + $0xd0] ss:$8 sps:$4 sm:$0xff]  }
  0x19   : > { %1462 = vmatprep.subr.bf16.mxu0 %v1614_v10  ;;  %1569 = vmatprep.subr.bf16.mxu1 %v1614_v10  ;;  %v1656_v40 = vld [vmem:[%s1763_s11 + $0x64] ss:$8 sps:$4 sm:$0xff]   ;;  %v1660_v42 = vld [vmem:[%s1763_s11 + $0x60] ss:$8 sps:$4 sm:$0xff]   ;;  %v1662_v44 = vld [vmem:[%s1763_s11 + $0x74] ss:$8 sps:$4 sm:$0xff]  }
  0x1a   : > { %v1658_v41 = vld [vmem:[%s1763_s11 + $0xe4] ss:$8 sps:$4 sm:$0xff]   ;;  %v1661_v43 = vld [vmem:[%s1763_s11 + $0xe0] ss:$8 sps:$4 sm:$0xff]   ;;  %v1664_v45 = vld [vmem:[%s1763_s11 + $0xf4] ss:$8 sps:$4 sm:$0xff]  }
  0x1b   : > { %v1666_v46 = vld [vmem:[%s1763_s11 + $0x70] ss:$8 sps:$4 sm:$0xff]  }
  0x1c   : > { %1463 = vmatpush3.bf16.msra.mxu0 %v1615_v13  ;;  %1577 = vmatpush3.bf16.msra.mxu1 %v1615_v13  ;;  %v1667_v47 = vld [vmem:[%s1763_s11 + $0xf0] ss:$8 sps:$4 sm:$0xff]  }
  0x1d   : > { %1464 = vmatprep.subr.bf16.mxu0 %v1616_v14  ;;  %1570 = vmatprep.subr.bf16.mxu1 %v1616_v14 }
  0x20   : > { %1465 = vmatpush3.bf16.msra.mxu0 %v1617_v15  ;;  %1578 = vmatpush3.bf16.msra.mxu1 %v1617_v15 }
  0x21   : > { %1466 = vmatprep.subr.bf16.mxu0 %v1618_v16  ;;  %1571 = vmatprep.subr.bf16.mxu1 %v1618_v16 }
  0x24   : > { %1467 = vmatpush3.bf16.msra.mxu0 %v1619_v17  ;;  %1579 = vmatpush3.bf16.msra.mxu1 %v1619_v17 }
  0x27   : > { %689 = vmatmul.mubr.bf16.vlgmr.msra.gmra.mrb[0].mxu0 %v1620_v18  ;;  %753 = vmatmul.mubr.bf16.vlgmr.msra.gmra.mrb[0].mxu1 %v1623_v19 }
  0x28   : > { %696 = vmatprep.mubr.bf16.mxu0 %v1626_v20  ;;  %760 = vmatprep.mubr.bf16.mxu1 %v1628_v21 }
  0x2f   : > { %697 = vmatmul.mubr.bf16.gmra.mrb[4].mxu0 %v1630_v22  ;;  %761 = vmatmul.mubr.bf16.gmra.mrb[4].mxu1 %v1631_v23 }
  0x30   : > { %704 = vmatprep.mubr.bf16.mxu0 %v1632_v24  ;;  %768 = vmatprep.mubr.bf16.mxu1 %v1634_v25 }
  0x37   : > { %705 = vmatmul.mubr.bf16.gmra.mrb[8].mxu0 %v1636_v26  ;;  %769 = vmatmul.mubr.bf16.gmra.mrb[8].mxu1 %v1637_v27 }
  0x38   : > { %712 = vmatprep.mubr.bf16.mxu0 %v1638_v28  ;;  %776 = vmatprep.mubr.bf16.mxu1 %v1640_v29 }
  0x3f   : > { %713 = vmatmul.mubr.bf16.gmra.mrb[12].mxu0 %v1642_v30  ;;  %777 = vmatmul.mubr.bf16.gmra.mrb[12].mxu1 %v1643_v31 }
  0x40   : > { %720 = vmatprep.mubr.bf16.mxu0 %v1644_v32  ;;  %784 = vmatprep.mubr.bf16.mxu1 %v1646_v33 }
  0x47   : > { %721 = vmatmul.mubr.bf16.gmra.mrb[16].mxu0 %v1648_v34  ;;  %785 = vmatmul.mubr.bf16.gmra.mrb[16].mxu1 %v1649_v35 }
  0x48   : > { %728 = vmatprep.mubr.bf16.mxu0 %v1650_v36  ;;  %792 = vmatprep.mubr.bf16.mxu1 %v1652_v37 }
  0x4f   : > { %729 = vmatmul.mubr.bf16.gmra.mrb[20].mxu0 %v1654_v38  ;;  %793 = vmatmul.mubr.bf16.gmra.mrb[20].mxu1 %v1655_v39 }
  0x50   : > { %736 = vmatprep.mubr.bf16.mxu0 %v1656_v40  ;;  %800 = vmatprep.mubr.bf16.mxu1 %v1658_v41 }
  0x57   : > { %737 = vmatmul.mubr.bf16.gmra.mrb[24].mxu0 %v1660_v42  ;;  %801 = vmatmul.mubr.bf16.gmra.mrb[24].mxu1 %v1661_v43 }
  0x58   : > { %744 = vmatprep.mubr.bf16.mxu0 %v1662_v44  ;;  %808 = vmatprep.mubr.bf16.mxu1 %v1664_v45 }
  0x5f   : > { %745 = vmatmul.mubr.bf16.gmra.mrb[28].mxu0 %v1666_v46  ;;  %809 = vmatmul.mubr.bf16.gmra.mrb[28].mxu1 %v1667_v47 }
  0xfa   : > { %v1468_v48 = vpop.f32.mrb[0].mxu0  ;;  %v1516_v49 = vpop.f32.mrb[0].mxu1 }
  0xfb   : > { %v1469_v50 = vpop.f32.mrb[1].mxu0  ;;  %v1517_v51 = vpop.f32.mrb[1].mxu1 }
  0xfc   : > { %v1470_v52 = vadd.f32 %v1469_v50, %v1468_v48  ;;  %v1518_v53 = vadd.f32 %v1517_v51, %v1516_v49  ;;  %v1471_v54 = vpop.f32.mrb[2].mxu0  ;;  %v1519_v55 = vpop.f32.mrb[2].mxu1 }
  0xfd   : > { %v1472_v57 = vpop.f32.mrb[3].mxu0  ;;  %v1520_v58 = vpop.f32.mrb[3].mxu1 }
  0xfe   : > { %v1473_v59 = vadd.f32 %v1472_v57, %v1471_v54  ;;  %v1521_v60 = vadd.f32 %v1520_v58, %v1519_v55  ;;  %v923_v61 = vadd.f32 %v1470_v52, %v1821_v56  ;;  %v939_v62 = vadd.f32 %v1518_v53, %v1821_v56 }
 0x100   : > { %v924_v63 = vadd.f32 %v1473_v59, %v1821_v56  ;;  %v940_v0 = vadd.f32 %v1521_v60, %v1821_v56 }
 0x102   : > { %v1360_v1 = vpack.c.bf16 %v924_v63, %v923_v61  ;;  %v1400_v2 = vpack.c.bf16 %v940_v0, %v939_v62  ;;  %v1474_v3 = vpop.f32.mrb[4].mxu0  ;;  %v1522_v4 = vpop.f32.mrb[4].mxu1 }
 0x103   : > { %v1475_v5 = vpop.f32.mrb[5].mxu0  ;;  %v1523_v6 = vpop.f32.mrb[5].mxu1 }
 0x104   : > { %1361 = vst [vmem:[%s1831_s8] sm:$0xff] %v1360_v1   ;;  %1444 = vst [vmem:[%s1831_s8 + $0x40] sm:$0xff] %v1400_v2   ;;  %v1476_v7 = vadd.f32 %v1475_v5, %v1474_v3  ;;  %v1524_v8 = vadd.f32 %v1523_v6, %v1522_v4  ;;  %v1477_v9 = vpop.f32.mrb[6].mxu0  ;;  %v1525_v10 = vpop.f32.mrb[6].mxu1 }
 0x105   : > { %v1478_v11 = vpop.f32.mrb[7].mxu0  ;;  %v1526_v12 = vpop.f32.mrb[7].mxu1 }
 0x106   : > { %v1479_v13 = vadd.f32 %v1478_v11, %v1477_v9  ;;  %v1527_v14 = vadd.f32 %v1526_v12, %v1525_v10  ;;  %v925_v15 = vadd.f32 %v1476_v7, %v1821_v56  ;;  %v941_v16 = vadd.f32 %v1524_v8, %v1821_v56 }
 0x108   : > { %v926_v17 = vadd.f32 %v1479_v13, %v1821_v56  ;;  %v942_v18 = vadd.f32 %v1527_v14, %v1821_v56 }
 0x10a   : > { %v1365_v19 = vpack.c.bf16 %v926_v17, %v925_v15  ;;  %v1405_v20 = vpack.c.bf16 %v942_v18, %v941_v16  ;;  %v1480_v21 = vpop.f32.mrb[8].mxu0  ;;  %v1528_v22 = vpop.f32.mrb[8].mxu1 }
 0x10b   : > { %v1481_v23 = vpop.f32.mrb[9].mxu0  ;;  %v1529_v24 = vpop.f32.mrb[9].mxu1 }
 0x10c   : > { %1437 = vst [vmem:[%s1831_s8 + $0x8] sm:$0xff] %v1365_v19   ;;  %1445 = vst [vmem:[%s1831_s8 + $0x48] sm:$0xff] %v1405_v20   ;;  %v1482_v25 = vadd.f32 %v1481_v23, %v1480_v21  ;;  %v1530_v26 = vadd.f32 %v1529_v24, %v1528_v22  ;;  %v1483_v27 = vpop.f32.mrb[10].mxu0  ;;  %v1531_v28 = vpop.f32.mrb[10].mxu1 }
 0x10d   : > { %v1484_v29 = vpop.f32.mrb[11].mxu0  ;;  %v1532_v30 = vpop.f32.mrb[11].mxu1 }
 0x10e   : > { %v1485_v31 = vadd.f32 %v1484_v29, %v1483_v27  ;;  %v1533_v32 = vadd.f32 %v1532_v30, %v1531_v28  ;;  %v927_v33 = vadd.f32 %v1482_v25, %v1821_v56  ;;  %v943_v34 = vadd.f32 %v1530_v26, %v1821_v56 }
 0x110   : > { %v928_v35 = vadd.f32 %v1485_v31, %v1821_v56  ;;  %v944_v36 = vadd.f32 %v1533_v32, %v1821_v56 }
 0x112   : > { %v1370_v37 = vpack.c.bf16 %v928_v35, %v927_v33  ;;  %v1410_v38 = vpack.c.bf16 %v944_v36, %v943_v34  ;;  %v1486_v39 = vpop.f32.mrb[12].mxu0  ;;  %v1534_v40 = vpop.f32.mrb[12].mxu1 }
 0x113   : > { %v1487_v41 = vpop.f32.mrb[13].mxu0  ;;  %v1535_v42 = vpop.f32.mrb[13].mxu1 }
 0x114   : > { %1438 = vst [vmem:[%s1831_s8 + $0x10] sm:$0xff] %v1370_v37   ;;  %1446 = vst [vmem:[%s1831_s8 + $0x50] sm:$0xff] %v1410_v38   ;;  %v1488_v43 = vadd.f32 %v1487_v41, %v1486_v39  ;;  %v1536_v44 = vadd.f32 %v1535_v42, %v1534_v40  ;;  %v1489_v45 = vpop.f32.mrb[14].mxu0  ;;  %v1537_v46 = vpop.f32.mrb[14].mxu1 }
 0x115   : > { %v1490_v47 = vpop.f32.mrb[15].mxu0  ;;  %v1538_v48 = vpop.f32.mrb[15].mxu1 }
 0x116   : > { %v1491_v49 = vadd.f32 %v1490_v47, %v1489_v45  ;;  %v1539_v50 = vadd.f32 %v1538_v48, %v1537_v46  ;;  %v929_v51 = vadd.f32 %v1488_v43, %v1821_v56  ;;  %v945_v52 = vadd.f32 %v1536_v44, %v1821_v56 }
 0x118   : > { %v930_v53 = vadd.f32 %v1491_v49, %v1821_v56  ;;  %v946_v54 = vadd.f32 %v1539_v50, %v1821_v56 }
 0x11a   : > { %v1375_v55 = vpack.c.bf16 %v930_v53, %v929_v51  ;;  %v1415_v57 = vpack.c.bf16 %v946_v54, %v945_v52  ;;  %v1492_v58 = vpop.f32.mrb[16].mxu0  ;;  %v1540_v59 = vpop.f32.mrb[16].mxu1 }
 0x11b   : > { %v1493_v60 = vpop.f32.mrb[17].mxu0  ;;  %v1541_v61 = vpop.f32.mrb[17].mxu1 }
 0x11c   : > { %1439 = vst [vmem:[%s1831_s8 + $0x18] sm:$0xff] %v1375_v55   ;;  %1447 = vst [vmem:[%s1831_s8 + $0x58] sm:$0xff] %v1415_v57   ;;  %v1494_v62 = vadd.f32 %v1493_v60, %v1492_v58  ;;  %v1542_v63 = vadd.f32 %v1541_v61, %v1540_v59  ;;  %v1495_v0 = vpop.f32.mrb[18].mxu0  ;;  %v1543_v1 = vpop.f32.mrb[18].mxu1 }
 0x11d   : > { %v1496_v2 = vpop.f32.mrb[19].mxu0  ;;  %v1544_v3 = vpop.f32.mrb[19].mxu1 }
 0x11e   : > { %v1497_v4 = vadd.f32 %v1496_v2, %v1495_v0  ;;  %v1545_v5 = vadd.f32 %v1544_v3, %v1543_v1  ;;  %v931_v6 = vadd.f32 %v1494_v62, %v1821_v56  ;;  %v947_v7 = vadd.f32 %v1542_v63, %v1821_v56 }
 0x120   : > { %v932_v8 = vadd.f32 %v1497_v4, %v1821_v56  ;;  %v948_v9 = vadd.f32 %v1545_v5, %v1821_v56 }
 0x122   : > { %v1380_v10 = vpack.c.bf16 %v932_v8, %v931_v6  ;;  %v1420_v11 = vpack.c.bf16 %v948_v9, %v947_v7  ;;  %v1498_v12 = vpop.f32.mrb[20].mxu0  ;;  %v1546_v13 = vpop.f32.mrb[20].mxu1 }
 0x123   : > { %v1499_v14 = vpop.f32.mrb[21].mxu0  ;;  %v1547_v15 = vpop.f32.mrb[21].mxu1 }
 0x124   : > { %1440 = vst [vmem:[%s1831_s8 + $0x20] sm:$0xff] %v1380_v10   ;;  %1448 = vst [vmem:[%s1831_s8 + $0x60] sm:$0xff] %v1420_v11   ;;  %v1500_v16 = vadd.f32 %v1499_v14, %v1498_v12  ;;  %v1548_v17 = vadd.f32 %v1547_v15, %v1546_v13  ;;  %v1501_v18 = vpop.f32.mrb[22].mxu0  ;;  %v1549_v19 = vpop.f32.mrb[22].mxu1 }
 0x125   : > { %v1502_v20 = vpop.f32.mrb[23].mxu0  ;;  %v1550_v21 = vpop.f32.mrb[23].mxu1 }
 0x126   : > { %v1503_v22 = vadd.f32 %v1502_v20, %v1501_v18  ;;  %v1551_v23 = vadd.f32 %v1550_v21, %v1549_v19  ;;  %v933_v24 = vadd.f32 %v1500_v16, %v1821_v56  ;;  %v949_v25 = vadd.f32 %v1548_v17, %v1821_v56 }
 0x128   : > { %v934_v26 = vadd.f32 %v1503_v22, %v1821_v56  ;;  %v950_v27 = vadd.f32 %v1551_v23, %v1821_v56 }
 0x12a   : > { %v1385_v28 = vpack.c.bf16 %v934_v26, %v933_v24  ;;  %v1425_v29 = vpack.c.bf16 %v950_v27, %v949_v25  ;;  %v1504_v30 = vpop.f32.mrb[24].mxu0  ;;  %v1552_v31 = vpop.f32.mrb[24].mxu1 }
 0x12b   : > { %v1505_v32 = vpop.f32.mrb[25].mxu0  ;;  %v1553_v33 = vpop.f32.mrb[25].mxu1 }
 0x12c   : > { %1441 = vst [vmem:[%s1831_s8 + $0x28] sm:$0xff] %v1385_v28   ;;  %1449 = vst [vmem:[%s1831_s8 + $0x68] sm:$0xff] %v1425_v29   ;;  %v1506_v34 = vadd.f32 %v1505_v32, %v1504_v30  ;;  %v1554_v35 = vadd.f32 %v1553_v33, %v1552_v31  ;;  %v1507_v36 = vpop.f32.mrb[26].mxu0  ;;  %v1555_v37 = vpop.f32.mrb[26].mxu1 }
 0x12d   : > { %v1508_v38 = vpop.f32.mrb[27].mxu0  ;;  %v1556_v39 = vpop.f32.mrb[27].mxu1 }
 0x12e   : > { %v1509_v40 = vadd.f32 %v1508_v38, %v1507_v36  ;;  %v1557_v41 = vadd.f32 %v1556_v39, %v1555_v37  ;;  %v935_v42 = vadd.f32 %v1506_v34, %v1821_v56  ;;  %v951_v43 = vadd.f32 %v1554_v35, %v1821_v56 }
 0x130   : > { %v936_v44 = vadd.f32 %v1509_v40, %v1821_v56  ;;  %v952_v45 = vadd.f32 %v1557_v41, %v1821_v56 }
 0x132   : > { %v1390_v46 = vpack.c.bf16 %v936_v44, %v935_v42  ;;  %v1430_v47 = vpack.c.bf16 %v952_v45, %v951_v43  ;;  %v1510_v48 = vpop.f32.mrb[28].mxu0  ;;  %v1558_v49 = vpop.f32.mrb[28].mxu1 }
 0x133   : > { %v1511_v50 = vpop.f32.mrb[29].mxu0  ;;  %v1559_v51 = vpop.f32.mrb[29].mxu1 }
 0x134   : > { %1442 = vst [vmem:[%s1831_s8 + $0x30] sm:$0xff] %v1390_v46   ;;  %1450 = vst [vmem:[%s1831_s8 + $0x70] sm:$0xff] %v1430_v47   ;;  %v1512_v52 = vadd.f32 %v1511_v50, %v1510_v48  ;;  %v1560_v53 = vadd.f32 %v1559_v51, %v1558_v49  ;;  %v1513_v54 = vpop.f32.mrb[30].mxu0  ;;  %v1561_v55 = vpop.f32.mrb[30].mxu1 }
 0x135   : > { %v1514_v57 = vpop.f32.mrb[31].mxu0  ;;  %v1562_v58 = vpop.f32.mrb[31].mxu1 }
 0x136   : > { %v1515_v59 = vadd.f32 %v1514_v57, %v1513_v54  ;;  %v1563_v60 = vadd.f32 %v1562_v58, %v1561_v55  ;;  %v937_v61 = vadd.f32 %v1512_v52, %v1821_v56  ;;  %v953_v62 = vadd.f32 %v1560_v53, %v1821_v56 }
 0x138   : > { %v938_v63 = vadd.f32 %v1515_v59, %v1821_v56  ;;  %v954_v0 = vadd.f32 %v1563_v60, %v1821_v56 }
 0x13a   : > { %v1395_v1 = vpack.c.bf16 %v938_v63, %v937_v61  ;;  %v1435_v2 = vpack.c.bf16 %v954_v0, %v953_v62 }
 0x13c   : > { %1443 = vst [vmem:[%s1831_s8 + $0x38] sm:$0xff] %v1395_v1   ;;  %1451 = vst [vmem:[%s1831_s8 + $0x78] sm:$0xff] %v1435_v2  }
 0x13d PF: > { %s13_s14 = sadd.s32 1, %s1690_s14   ;;  %s1890_s12 = smov %s1686_s13 }
 0x13e   : > { %p10_p5 = scmp.ge.s32.totalorder %s13_s14, 10   ;;  %s1891_s13 = smov %s1893_s15 }
 0x140   :  { %12 = sbr.rel (!%p10_p5) target bundleno = 2 (0x2), region = 76 }

</bundles_post_ra>
